<compile_context>
chip_gen: v7x
topology: tpu7x:2x2x1
jax: 0.10.0
libtpu: 0.0.40
codegen_flags: <defaults>
</compile_context>

<pallas_src>
import jax
import jax.numpy as jnp
from jax.experimental import pallas as pl
from jax.experimental.pallas import tpu as pltpu


def _cdiv(a, b):
    return -(-a // b)


def _round_up(a, b):
    return _cdiv(a, b) * b


def siamese_kernel(x1_ref, x2_ref, w1_ref, b1_ref, w2c_ref, b2_ref, out_ref):
    w1 = w1_ref[...]                                                  # (512, 64)
    b1 = b1_ref[...]                                                  # (1, 64)  f32

    # Two independent MXU matmuls (no sublane-concat VMEM copy), f32 accum.
    h1 = jnp.dot(x1_ref[...], w1, preferred_element_type=jnp.float32)  # (tb, 64)
    h2 = jnp.dot(x2_ref[...], w1, preferred_element_type=jnp.float32)  # (tb, 64)
    c1 = jnp.maximum(h1 + b1, 0.0)
    c2 = jnp.maximum(h2 + b1, 0.0)

    # Decomposed classification layer: pure VPU mul-adds + one lane reduce.
    wa = w2c_ref[0:1, :]                                              # (1, 64)
    wb = w2c_ref[1:2, :]
    wc = w2c_ref[2:3, :]
    s = c1 * wa + c2 * wb + (c1 * c2) * wc                            # (tb, 64)
    logits = jnp.sum(s, axis=1, keepdims=True) + b2_ref[...]          # (tb, 1)
    out_ref[...] = jax.nn.sigmoid(logits).astype(out_ref.dtype)


def siamese_forward(x1, x2, w1, b1, w2, b2, *,
                    tile_b_max=1024, input_dtype=jnp.bfloat16, min_grid=2):
    """x1, x2: (B, 512); w1: (512, 64); b1: (1, 64); w2: (256, 1); b2: (1, 1).

    input_dtype: dtype for x1/x2/w1 fed to the MXU (default bf16, f32 accum).
    Pass input_dtype=None (or jnp.float32) for full-f32 compute.
    """
    B, D_in = x1.shape
    H = w1.shape[1]  # 64
    assert w2.shape == (4 * H, 1)

    # Precompute the decomposed second-layer weights (exact in f32).
    w2r = w2.reshape(4, H)                        # rows: [c1 | c2 | diff | mul]
    w2c = jnp.stack(
        [w2r[0] + w2r[2],                         # multiplies c1
         w2r[1] - w2r[2],                         # multiplies c2
         w2r[3]],                                 # multiplies c1*c2
        axis=0,
    ).astype(jnp.float32)                         # (3, 64)
    b1 = b1.reshape(1, H).astype(jnp.float32)
    b2 = b2.reshape(1, 1).astype(jnp.float32)

    # Low-precision MXU inputs (default bf16): halves HBM traffic.  Ideally the
    # caller already provides bf16 so this cast fuses into the producing op.
    if input_dtype is not None:
        x1 = x1.astype(input_dtype)
        x2 = x2.astype(input_dtype)
        w1 = w1.astype(input_dtype)

    # Dtype-aware sublane multiple: 8 (f32) / 16 (bf16) / 32 (int8, fp8).
    itemsize = jnp.dtype(x1.dtype).itemsize
    sub = {4: 8, 2: 16, 1: 32}[itemsize]

    # Padding policy: pad B only up to the sublane multiple, then split into
    # balanced tiles (never round B up to a whole tile_b_max).
    Bs = max(sub, _round_up(B, sub))
    num_tiles = _cdiv(Bs, tile_b_max)
    # v7x has 2 TensorCores: make sure the parallel batch axis has >=2 steps
    # whenever the batch is large enough to split.
    if num_tiles < min_grid and Bs >= min_grid * sub:
        num_tiles = min_grid
    tile_b = _round_up(_cdiv(Bs, num_tiles), sub)
    Bp = num_tiles * tile_b
    pad = Bp - B
    if pad:
        x1 = jnp.pad(x1, ((0, pad), (0, 0)))
        x2 = jnp.pad(x2, ((0, pad), (0, 0)))
    grid = (num_tiles,)

    out = pl.pallas_call(
        siamese_kernel,
        out_shape=jax.ShapeDtypeStruct((Bp, 1), jnp.float32),
        grid_spec=pltpu.PrefetchScalarGridSpec(
            num_scalar_prefetch=0,
            grid=grid,
            in_specs=[
                pl.BlockSpec((tile_b, D_in), lambda i: (i, 0)),   # x1 tile
                pl.BlockSpec((tile_b, D_in), lambda i: (i, 0)),   # x2 tile
                pl.BlockSpec((D_in, H), lambda i: (0, 0)),        # W1 (512, 64)
                pl.BlockSpec((1, H), lambda i: (0, 0)),           # b1 (1, 64)
                pl.BlockSpec((3, H), lambda i: (0, 0)),           # combined W2 (3, 64)
                pl.BlockSpec((1, 1), lambda i: (0, 0)),           # b2 (1, 1)
            ],
            out_specs=pl.BlockSpec((tile_b, 1), lambda i: (i, 0)),
        ),
        compiler_params=pltpu.CompilerParams(
            dimension_semantics=("parallel",),
            vmem_limit_bytes=32 * 1024 * 1024,  # conservative: fits v7x's 64 MiB VMEM
        ),
    )(x1, x2, w1, b1, w2c, b2)
    return out[:B]


def reference_forward(x1, x2, w1, b1, w2, b2):
    c1 = jnp.maximum(x1 @ w1 + b1, 0.0)
    c2 = jnp.maximum(x2 @ w1 + b1, 0.0)
    v = jnp.concatenate([c1, c2, c1 - c2, c1 * c2], axis=1)
    return jax.nn.sigmoid(v @ w2 + b2)


if __name__ == "__main__":
    key = jax.random.PRNGKey(0)
    k_x1, k_x2, k_w1, k_b1, k_w2, k_b2 = jax.random.split(key, 6)

    B, D_in, H = 8, 512, 64   # D_in/H fixed by the module (Linear(512,64), Linear(256,1))

    x1 = jax.random.normal(k_x1, (B, D_in), dtype=jnp.float32)
    x2 = jax.random.normal(k_x2, (B, D_in), dtype=jnp.float32)

    # Deterministic parameter init (uniform, roughly PyTorch default scale).
    w1 = jax.random.uniform(k_w1, (D_in, H), jnp.float32, -1.0, 1.0) / jnp.sqrt(D_in)
    b1 = jax.random.uniform(k_b1, (1, H), jnp.float32, -1.0, 1.0) / jnp.sqrt(D_in)
    w2 = jax.random.uniform(k_w2, (4 * H, 1), jnp.float32, -1.0, 1.0) / jnp.sqrt(4 * H)
    b2 = jax.random.uniform(k_b2, (1, 1), jnp.float32, -1.0, 1.0) / jnp.sqrt(4 * H)

    ref = reference_forward(x1, x2, w1, b1, w2, b2)

    # 1) Full-f32 path: the second-layer decomposition is exact -> tight check.
    out_f32 = jax.block_until_ready(
        siamese_forward(x1, x2, w1, b1, w2, b2, input_dtype=None))
    assert out_f32.shape == (B, 1)
    assert jnp.allclose(out_f32, ref, atol=1e-5, rtol=1e-5)

    # 2) Default bf16 input path (production config): looser tolerance vs. the
    #    f32 reference; sigmoid + 64-term reduce keep the error well under 2e-2.
    out_bf16 = jax.block_until_ready(siamese_forward(x1, x2, w1, b1, w2, b2))
    assert out_bf16.shape == (B, 1)
    assert jnp.allclose(out_bf16, ref, atol=2e-2, rtol=2e-2)

    print("KERNEL_OK")
</pallas_src>

<mosaic_0001>
module attributes {stable_mosaic.version = 11 : i64} {
  func.func @siamese_kernel(%arg0: i32, %arg1: memref<8x512xf32, #tpu.memory_space<vmem>>, %arg2: memref<8x512xf32, #tpu.memory_space<vmem>>, %arg3: memref<512x64xf32, #tpu.memory_space<vmem>>, %arg4: memref<1x64xf32, #tpu.memory_space<vmem>>, %arg5: memref<3x64xf32, #tpu.memory_space<vmem>>, %arg6: memref<1x1xf32, #tpu.memory_space<vmem>>, %arg7: memref<8x1xf32, #tpu.memory_space<vmem>>) attributes {dimension_semantics = [#tpu.dimension_semantics<parallel>], iteration_bounds = array<i64: 1>, scalar_prefetch = 0 : i64, scratch_operands = 0 : i64, tpu.core_type = #tpu.core_type<tc>, window_params = [{transform_indices = @transform_0, window_bounds = array<i64: 8, 512>}, {transform_indices = @transform_1, window_bounds = array<i64: 8, 512>}, {pipeline_mode = #tpu.pipeline_mode<synchronous>, transform_indices = @transform_2, window_bounds = array<i64: 512, 64>}, {pipeline_mode = #tpu.pipeline_mode<synchronous>, transform_indices = @transform_3, window_bounds = array<i64: 1, 64>}, {pipeline_mode = #tpu.pipeline_mode<synchronous>, transform_indices = @transform_4, window_bounds = array<i64: 3, 64>}, {pipeline_mode = #tpu.pipeline_mode<synchronous>, transform_indices = @transform_5, window_bounds = array<i64: 1, 1>}, {transform_indices = @transform_6, window_bounds = array<i64: 8, 1>}]} {
    %c0 = arith.constant 0 : index
    %c0_0 = arith.constant 0 : index
    %0 = vector.load %arg3[%c0, %c0_0] : memref<512x64xf32, #tpu.memory_space<vmem>>, vector<512x64xf32>
    %c0_1 = arith.constant 0 : index
    %c0_2 = arith.constant 0 : index
    %1 = vector.load %arg4[%c0_1, %c0_2] : memref<1x64xf32, #tpu.memory_space<vmem>>, vector<1x64xf32>
    %c0_3 = arith.constant 0 : index
    %c0_4 = arith.constant 0 : index
    %2 = vector.load %arg1[%c0_3, %c0_4] : memref<8x512xf32, #tpu.memory_space<vmem>>, vector<8x512xf32>
    %cst = arith.constant dense<0.000000e+00> : vector<8x64xf32>
    %3 = tpu.matmul %2, %0, %cst {dimension_numbers = #tpu.dot_dimension_numbers<[1], [0], [0], [1], [0, 0, 1, 1], [], []>} : vector<8x512xf32>, vector<512x64xf32>, vector<8x64xf32> -> vector<8x64xf32>
    %c0_5 = arith.constant 0 : index
    %c0_6 = arith.constant 0 : index
    %4 = vector.load %arg2[%c0_5, %c0_6] : memref<8x512xf32, #tpu.memory_space<vmem>>, vector<8x512xf32>
    %cst_7 = arith.constant dense<0.000000e+00> : vector<8x64xf32>
    %5 = tpu.matmul %4, %0, %cst_7 {dimension_numbers = #tpu.dot_dimension_numbers<[1], [0], [0], [1], [0, 0, 1, 1], [], []>} : vector<8x512xf32>, vector<512x64xf32>, vector<8x64xf32> -> vector<8x64xf32>
    %6 = vector.broadcast %1 : vector<1x64xf32> to vector<8x64xf32>
    %7 = arith.addf %3, %6 : vector<8x64xf32>
    %cst_8 = arith.constant 0.000000e+00 : f32
    %8 = vector.broadcast %cst_8 : f32 to vector<8x64xf32>
    %9 = arith.maximumf %7, %8 : vector<8x64xf32>
    %10 = vector.broadcast %1 : vector<1x64xf32> to vector<8x64xf32>
    %11 = arith.addf %5, %10 : vector<8x64xf32>
    %cst_9 = arith.constant 0.000000e+00 : f32
    %12 = vector.broadcast %cst_9 : f32 to vector<8x64xf32>
    %13 = arith.maximumf %11, %12 : vector<8x64xf32>
    %c0_10 = arith.constant 0 : index
    %c0_11 = arith.constant 0 : index
    %14 = vector.load %arg5[%c0_10, %c0_11] : memref<3x64xf32, #tpu.memory_space<vmem>>, vector<1x64xf32>
    %c1 = arith.constant 1 : index
    %c0_12 = arith.constant 0 : index
    %15 = vector.load %arg5[%c1, %c0_12] : memref<3x64xf32, #tpu.memory_space<vmem>>, vector<1x64xf32>
    %c2 = arith.constant 2 : index
    %c0_13 = arith.constant 0 : index
    %16 = vector.load %arg5[%c2, %c0_13] : memref<3x64xf32, #tpu.memory_space<vmem>>, vector<1x64xf32>
    %17 = vector.broadcast %14 : vector<1x64xf32> to vector<8x64xf32>
    %18 = arith.mulf %9, %17 : vector<8x64xf32>
    %19 = vector.broadcast %15 : vector<1x64xf32> to vector<8x64xf32>
    %20 = arith.mulf %13, %19 : vector<8x64xf32>
    %21 = arith.addf %18, %20 : vector<8x64xf32>
    %22 = arith.mulf %9, %13 : vector<8x64xf32>
    %23 = vector.broadcast %16 : vector<1x64xf32> to vector<8x64xf32>
    %24 = arith.mulf %22, %23 : vector<8x64xf32>
    %25 = arith.addf %21, %24 : vector<8x64xf32>
    %cst_14 = arith.constant dense<0.000000e+00> : vector<8xf32>
    %26 = vector.multi_reduction <add>, %25, %cst_14 [1] : vector<8x64xf32> to vector<8xf32>
    %27 = vector.shape_cast %26 : vector<8xf32> to vector<8x1xf32>
    %c0_15 = arith.constant 0 : index
    %c0_16 = arith.constant 0 : index
    %28 = vector.load %arg6[%c0_15, %c0_16] : memref<1x1xf32, #tpu.memory_space<vmem>>, vector<1x1xf32>
    %29 = vector.broadcast %28 : vector<1x1xf32> to vector<8x1xf32>
    %30 = arith.addf %27, %29 : vector<8x1xf32>
    %31 = arith.negf %30 : vector<8x1xf32>
    %32 = math.exp %31 : vector<8x1xf32>
    %cst_17 = arith.constant 1.000000e+00 : f32
    %33 = vector.broadcast %cst_17 : f32 to vector<8x1xf32>
    %34 = arith.addf %33, %32 : vector<8x1xf32>
    %35 = arith.divf %33, %34 : vector<8x1xf32>
    %c0_18 = arith.constant 0 : index
    %c0_19 = arith.constant 0 : index
    %36 = vector.load %arg7[%c0_18, %c0_19] : memref<8x1xf32, #tpu.memory_space<vmem>>, vector<8x1xf32>
    tpu.vector_store %arg7[%c0_18, %c0_19], %35 {strides = array<i32>} : memref<8x1xf32, #tpu.memory_space<vmem>>, vector<8x1xf32>,
    return
  }
  func.func @transform_0(%arg0: i32) -> (i32, i32) {
    %c0_i32 = arith.constant 0 : i32
    %c0_i32_0 = arith.constant 0 : i32
    return %arg0, %c0_i32 : i32, i32
  }
  func.func @transform_1(%arg0: i32) -> (i32, i32) {
    %c0_i32 = arith.constant 0 : i32
    %c0_i32_0 = arith.constant 0 : i32
    return %arg0, %c0_i32 : i32, i32
  }
  func.func @transform_2(%arg0: i32) -> (i32, i32) {
    %c0_i32 = arith.constant 0 : i32
    %c0_i32_0 = arith.constant 0 : i32
    %c0_i32_1 = arith.constant 0 : i32
    return %c0_i32, %c0_i32_0 : i32, i32
  }
  func.func @transform_3(%arg0: i32) -> (i32, i32) {
    %c0_i32 = arith.constant 0 : i32
    %c0_i32_0 = arith.constant 0 : i32
    %c0_i32_1 = arith.constant 0 : i32
    return %c0_i32, %c0_i32_0 : i32, i32
  }
  func.func @transform_4(%arg0: i32) -> (i32, i32) {
    %c0_i32 = arith.constant 0 : i32
    %c0_i32_0 = arith.constant 0 : i32
    %c0_i32_1 = arith.constant 0 : i32
    return %c0_i32, %c0_i32_0 : i32, i32
  }
  func.func @transform_5(%arg0: i32) -> (i32, i32) {
    %c0_i32 = arith.constant 0 : i32
    %c0_i32_0 = arith.constant 0 : i32
    %c0_i32_1 = arith.constant 0 : i32
    return %c0_i32, %c0_i32_0 : i32, i32
  }
  func.func @transform_6(%arg0: i32) -> (i32, i32) {
    %c0_i32 = arith.constant 0 : i32
    %c0_i32_0 = arith.constant 0 : i32
    return %arg0, %c0_i32 : i32, i32
  }
}

</mosaic_0001>

<bundles_post_ra>
// kernel: tpu_custom_call.1
= control target key start
LH: loop header
LB: loop body
LE: loop exit
PB: predicated region body
PF: predicated region fallthrough
CT: control target
= control target key end

     0   :  { %vm407_vm0 = vcmask 523264   ;;  %vm425_vm1 = vcmask 7168   ;;  %s1078_s2 = inlined_call_operand.vmem [shape: f32[512,64], index: 2, kind: input, shape index: {}]   ;;  %s1079_s0 = inlined_call_operand.vmem [shape: f32[8,512], index: 0, kind: input, shape index: {}]   ;;  %s1080_s1 = inlined_call_operand.vmem [shape: f32[8,512], index: 1, kind: input, shape index: {}]   ;;  %s1081_s5 = inlined_call_operand.<no memory space> [shape: f32[1,1], index: 5, kind: input, shape index: {}]   ;;  %s1082_s3 = inlined_call_operand.vmem [shape: f32[1,64], index: 3, kind: input, shape index: {}]   ;;  %s1083_s4 = inlined_call_operand.vmem [shape: f32[3,64], index: 4, kind: input, shape index: {}]   ;;  %s1084_s6 = inlined_call_operand.vmem [shape: f32[8,1], index: 6, kind: output, shape index: {}]  }
   0x1   :  { %v41_v0 = vld [vmem:[%s1078_s2 + $0x80] sm:$0xff]  ;;  %v42_v1 = vld [vmem:[%s1078_s2 + $0x88] sm:$0xff]  ;;  %v43_v11 = vld [vmem:[%s1078_s2 + $0x90] sm:$0xff] }
   0x2   :  { %v25_v2 = vld [vmem:[%s1078_s2] sm:$0xff]  ;;  %v753_v3 = vpack.c.bf16 %v42_v1, %v41_v0  ;;  %v26_v4 = vld [vmem:[%s1078_s2 + $0x8] sm:$0xff]  ;;  %v44_v13 = vld [vmem:[%s1078_s2 + $0x98] sm:$0xff] }
   0x3   :  { %v73_v5 = vld [vmem:[%s1078_s2 + $0x180] sm:$0xff]  ;;  %v74_v6 = vld [vmem:[%s1078_s2 + $0x188] sm:$0xff]  ;;  %v764_v7 = vpack.c.bf16 %v26_v4, %v25_v2  ;;  %v27_v14 = vld [vmem:[%s1078_s2 + $0x10] sm:$0xff]  ;;  %v791_v16 = vpack.c.bf16 %v44_v13, %v43_v11 }
   0x4   :  { %v766_v8 = vpack.c.bf16 %v74_v6, %v73_v5  ;;  %v57_v9 = vld [vmem:[%s1078_s2 + $0x100] sm:$0xff]  ;;  %v58_v10 = vld [vmem:[%s1078_s2 + $0x108] sm:$0xff]  ;;  %578 = vmatprep.subr.bf16.mxu0 %v753_v3  ;;  %v28_v15 = vld [vmem:[%s1078_s2 + $0x18] sm:$0xff] }
   0x5   :  { %v778_v12 = vpack.c.bf16 %v58_v10, %v57_v9  ;;  %580 = vmatpush3.bf16.msra.mxu0 %v764_v7  ;;  %v793_v17 = vpack.c.bf16 %v28_v15, %v27_v14  ;;  %v75_v18 = vld [vmem:[%s1078_s2 + $0x190] sm:$0xff]  ;;  %v76_v19 = vld [vmem:[%s1078_s2 + $0x198] sm:$0xff]  ;;  %v45_v23 = vld [vmem:[%s1078_s2 + $0xa0] sm:$0xff] }
   0x6   :  { %610 = vmatprep.subr.bf16.mxu1 %v766_v8  ;;  %v59_v20 = vld [vmem:[%s1078_s2 + $0x110] sm:$0xff]  ;;  %v805_v21 = vpack.c.bf16 %v76_v19, %v75_v18  ;;  %v60_v22 = vld [vmem:[%s1078_s2 + $0x118] sm:$0xff]  ;;  %v46_v24 = vld [vmem:[%s1078_s2 + $0xa8] sm:$0xff]  ;;  %582 = vmatprep.subr.bf16.mxu0 %v791_v16 }
   0x7   :  { %612 = vmatpush3.bf16.msra.mxu1 %v778_v12  ;;  %v817_v25 = vpack.c.bf16 %v60_v22, %v59_v20  ;;  %v819_v26 = vpack.c.bf16 %v46_v24, %v45_v23  ;;  %v29_v27 = vld [vmem:[%s1078_s2 + $0x20] sm:$0xff]  ;;  %v30_v28 = vld [vmem:[%s1078_s2 + $0x28] sm:$0xff]  ;;  %v47_v35 = vld [vmem:[%s1078_s2 + $0xb0] sm:$0xff] }
   0x8   :  { %v77_v29 = vld [vmem:[%s1078_s2 + $0x1a0] sm:$0xff]  ;;  %614 = vmatprep.subr.bf16.mxu1 %v805_v21  ;;  %v78_v30 = vld [vmem:[%s1078_s2 + $0x1a8] sm:$0xff]  ;;  %v841_v33 = vpack.c.bf16 %v30_v28, %v29_v27  ;;  %v48_v36 = vld [vmem:[%s1078_s2 + $0xb8] sm:$0xff] }
   0x9   :  { %v61_v31 = vld [vmem:[%s1078_s2 + $0x120] sm:$0xff]  ;;  %v62_v32 = vld [vmem:[%s1078_s2 + $0x128] sm:$0xff]  ;;  %584 = vmatpush3.bf16.msra.mxu0 %v793_v17  ;;  %v843_v34 = vpack.c.bf16 %v78_v30, %v77_v29  ;;  %v31_v37 = vld [vmem:[%s1078_s2 + $0x30] sm:$0xff]  ;;  %v858_v39 = vpack.c.bf16 %v48_v36, %v47_v35 }
   0xa   :  { %586 = vmatprep.subr.bf16.mxu0 %v819_v26  ;;  %v856_v38 = vpack.c.bf16 %v62_v32, %v61_v31  ;;  %v32_v40 = vld [vmem:[%s1078_s2 + $0x38] sm:$0xff]  ;;  %v79_v41 = vld [vmem:[%s1078_s2 + $0x1b0] sm:$0xff]  ;;  %v49_v46 = vld [vmem:[%s1078_s2 + $0xc0] sm:$0xff] }
   0xb   :  { %616 = vmatpush3.bf16.msra.mxu1 %v817_v25  ;;  %v80_v42 = vld [vmem:[%s1078_s2 + $0x1b8] sm:$0xff]  ;;  %v63_v44 = vld [vmem:[%s1078_s2 + $0x130] sm:$0xff]  ;;  %v50_v47 = vld [vmem:[%s1078_s2 + $0xc8] sm:$0xff]  ;;  %v885_v48 = vpack.c.bf16 %v32_v40, %v31_v37 }
   0xc   :  { %618 = vmatprep.subr.bf16.mxu1 %v843_v34  ;;  %v870_v43 = vpack.c.bf16 %v80_v42, %v79_v41  ;;  %v64_v45 = vld [vmem:[%s1078_s2 + $0x138] sm:$0xff]  ;;  %v81_v49 = vld [vmem:[%s1078_s2 + $0x1c0] sm:$0xff]  ;;  %v82_v50 = vld [vmem:[%s1078_s2 + $0x1c8] sm:$0xff]  ;;  %v897_v52 = vpack.c.bf16 %v50_v47, %v49_v46 }
   0xd   :  { %588 = vmatpush3.bf16.msra.mxu0 %v841_v33  ;;  %v895_v51 = vpack.c.bf16 %v64_v45, %v63_v44  ;;  %v33_v53 = vld [vmem:[%s1078_s2 + $0x40] sm:$0xff]  ;;  %v34_v54 = vld [vmem:[%s1078_s2 + $0x48] sm:$0xff]  ;;  %v909_v56 = vpack.c.bf16 %v82_v50, %v81_v49  ;;  %v51_v58 = vld [vmem:[%s1078_s2 + $0xd0] sm:$0xff] }
   0xe   :  { %590 = vmatprep.subr.bf16.mxu0 %v858_v39  ;;  %v65_v55 = vld [vmem:[%s1078_s2 + $0x140] sm:$0xff]  ;;  %v66_v57 = vld [vmem:[%s1078_s2 + $0x148] sm:$0xff]  ;;  %v52_v59 = vld [vmem:[%s1078_s2 + $0xd8] sm:$0xff]  ;;  %v927_v62 = vpack.c.bf16 %v34_v54, %v33_v53 }
   0xf   :  { %620 = vmatpush3.bf16.msra.mxu1 %v856_v38  ;;  %v83_v60 = vld [vmem:[%s1078_s2 + $0x1d0] sm:$0xff]  ;;  %v84_v61 = vld [vmem:[%s1078_s2 + $0x1d8] sm:$0xff]  ;;  %v931_v63 = vpack.c.bf16 %v66_v57, %v65_v55  ;;  %v933_v0 = vpack.c.bf16 %v52_v59, %v51_v58  ;;  %v53_v9 = vld [vmem:[%s1078_s2 + $0xe0] sm:$0xff] }
  0x10   :  { %622 = vmatprep.subr.bf16.mxu1 %v870_v43  ;;  %v35_v1 = vld [vmem:[%s1078_s2 + $0x50] sm:$0xff]  ;;  %v36_v2 = vld [vmem:[%s1078_s2 + $0x58] sm:$0xff]  ;;  %v945_v5 = vpack.c.bf16 %v84_v61, %v83_v60  ;;  %v54_v10 = vld [vmem:[%s1078_s2 + $0xe8] sm:$0xff] }
  0x11   :  { %592 = vmatpush3.bf16.msra.mxu0 %v885_v48  ;;  %v67_v4 = vld [vmem:[%s1078_s2 + $0x150] sm:$0xff]  ;;  %v68_v6 = vld [vmem:[%s1078_s2 + $0x158] sm:$0xff]  ;;  %v85_v11 = vld [vmem:[%s1078_s2 + $0x1e0] sm:$0xff]  ;;  %v963_v14 = vpack.c.bf16 %v36_v2, %v35_v1  ;;  %v975_v20 = vpack.c.bf16 %v54_v10, %v53_v9 }
  0x12   :  { %594 = vmatprep.subr.bf16.mxu0 %v897_v52  ;;  %v86_v13 = vld [vmem:[%s1078_s2 + $0x1e8] sm:$0xff]  ;;  %v37_v15 = vld [vmem:[%s1078_s2 + $0x60] sm:$0xff]  ;;  %v973_v19 = vpack.c.bf16 %v68_v6, %v67_v4  ;;  %v55_v28 = vld [vmem:[%s1078_s2 + $0xf0] sm:$0xff] }
  0x13   :  { %624 = vmatpush3.bf16.msra.mxu1 %v895_v51  ;;  %v38_v18 = vld [vmem:[%s1078_s2 + $0x68] sm:$0xff]  ;;  %v69_v22 = vld [vmem:[%s1078_s2 + $0x160] sm:$0xff]  ;;  %v633_v27 = vpack.c.bf16 %v86_v13, %v85_v11  ;;  %v56_v29 = vld [vmem:[%s1078_s2 + $0xf8] sm:$0xff] }
  0x14   :  { %626 = vmatprep.subr.bf16.mxu1 %v909_v56  ;;  %v70_v23 = vld [vmem:[%s1078_s2 + $0x168] sm:$0xff]  ;;  %v93_v30 = vld [vmem:[%s1079_s0 + $0x18] sm:$0xff]  ;;  %v87_v31 = vld [vmem:[%s1078_s2 + $0x1f0] sm:$0xff]  ;;  %v603_v35 = vpack.c.bf16 %v38_v18, %v37_v15  ;;  %v605_v37 = vpack.c.bf16 %v56_v29, %v55_v28 }
  0x15   :  { %596 = vmatpush3.bf16.msra.mxu0 %v927_v62  ;;  %v91_v24 = vld [vmem:[%s1079_s0 + $0x8] sm:$0xff]  ;;  %v88_v32 = vld [vmem:[%s1078_s2 + $0x1f8] sm:$0xff]  ;;  %238 = vmatprep.mubr.f32.mxu1 %v93_v30  ;;  %v635_v36 = vpack.c.bf16 %v70_v23, %v69_v22  ;;  %v39_v40 = vld [vmem:[%s1078_s2 + $0x70] sm:$0xff] }
  0x16   :  { %598 = vmatprep.subr.bf16.mxu0 %v933_v0  ;;  %168 = vmatprep.mubr.f32.mxu0 %v91_v24  ;;  %v40_v41 = vld [vmem:[%s1078_s2 + $0x78] sm:$0xff]  ;;  %v637_v42 = vpack.c.bf16 %v88_v32, %v87_v31  ;;  %v71_v44 = vld [vmem:[%s1078_s2 + $0x170] sm:$0xff]  ;;  %v90_v49 = vld [vmem:[%s1079_s0] sm:$0xff] }
  0x17   :  { %628 = vmatpush3.bf16.msra.mxu1 %v931_v63  ;;  %v72_v45 = vld [vmem:[%s1078_s2 + $0x178] sm:$0xff]  ;;  %v607_v46 = vpack.c.bf16 %v40_v41, %v39_v40  ;;  %v92_v50 = vld [vmem:[%s1079_s0 + $0x10] sm:$0xff]  ;;  %v95_v53 = vld [vmem:[%s1080_s1 + $0x8] sm:$0xff] }
  0x18   :  { %630 = vmatprep.subr.bf16.mxu1 %v945_v5  ;;  %v639_v47 = vpack.c.bf16 %v72_v45, %v71_v44  ;;  %v97_v54 = vld [vmem:[%s1080_s1 + $0x18] sm:$0xff]  ;;  %v432_v59 = vld [vmem:[%s1083_s4] ss:$0 sm:$0xff]  ;;  %v433_v60 = vld [vmem:[%s1083_s4 + $0x1] ss:$0 sm:$0xff] }
  0x19   :  { %600 = vmatpush3.bf16.msra.mxu0 %v963_v14 }
  0x1a   :  { %602 = vmatprep.subr.bf16.mxu0 %v975_v20 }
  0x1b   :  { %632 = vmatpush3.bf16.msra.mxu1 %v973_v19 }
  0x1c   :  { %634 = vmatprep.subr.bf16.mxu1 %v633_v27 }
  0x1d   :  { %604 = vmatpush3.bf16.msra.mxu0 %v603_v35 }
  0x1e   :  { %606 = vmatprep.subr.bf16.mxu0 %v605_v37 }
  0x1f   :  { %636 = vmatpush3.bf16.msra.mxu1 %v635_v36 }
  0x20   :  { %638 = vmatprep.subr.bf16.mxu1 %v637_v42 }
  0x21   :  { %608 = vmatpush3.bf16.msra.mxu0 %v607_v46 }
  0x22   :  { %642 = vmatprep.subr.bf16.mxu0 %v753_v3  ;;  %v94_v3 = vld [vmem:[%s1080_s1] sm:$0xff] }
  0x23   :  { %640 = vmatpush3.bf16.msra.mxu1 %v639_v47 }
  0x24   :  { %674 = vmatprep.subr.bf16.mxu1 %v766_v8  ;;  %169 = vmatmul.mubr.f32.vlgmr.msra.gmra.mrb[0].mxu0 %v90_v49  ;;  %v11_v8 = vstv %s1081_s5 }
  0x25   :  { %644 = vmatpush3.bf16.msra.mxu0 %v764_v7  ;;  %309 = vmatprep.mubr.f32.mxu0 %v95_v53  ;;  %v96_v7 = vld [vmem:[%s1080_s1 + $0x10] sm:$0xff]  ;;  %12 = vst [vmem:[#allocation2] sm:$0x1] %v11_v8 }
  0x26   :  { %239 = vmatmul.mubr.f32.vlgmr.msra.gmra.mrb[0].mxu1 %v92_v50  ;;  %646 = vmatprep.subr.bf16.mxu0 %v791_v16  ;;  %v431_v16 = vld [vmem:[%s1082_s3] ss:$0 sm:$0xff] }
  0x27   :  { %676 = vmatpush3.bf16.msra.mxu1 %v778_v12  ;;  %379 = vmatprep.mubr.f32.mxu1 %v97_v54 }
  0x28   :  { %678 = vmatprep.subr.bf16.mxu1 %v805_v21 }
  0x29   :  { %648 = vmatpush3.bf16.msra.mxu0 %v793_v17 }
  0x2a   :  { %650 = vmatprep.subr.bf16.mxu0 %v819_v26 }
  0x2b   :  { %680 = vmatpush3.bf16.msra.mxu1 %v817_v25 }
  0x2c   :  { %682 = vmatprep.subr.bf16.mxu1 %v843_v34  ;;  %v435_v9 = vld [vmem:[#allocation2] ss:$0 sm:$0xff] }
  0x2d   :  { %652 = vmatpush3.bf16.msra.mxu0 %v841_v33 }
  0x2e   :  { %654 = vmatprep.subr.bf16.mxu0 %v858_v39 }
  0x2f   :  { %684 = vmatpush3.bf16.msra.mxu1 %v856_v38 }
  0x30   :  { %686 = vmatprep.subr.bf16.mxu1 %v870_v43 }
  0x31   :  { %656 = vmatpush3.bf16.msra.mxu0 %v885_v48 }
  0x32   :  { %658 = vmatprep.subr.bf16.mxu0 %v897_v52 }
  0x33   :  { %688 = vmatpush3.bf16.msra.mxu1 %v895_v51 }
  0x34   :  { %690 = vmatprep.subr.bf16.mxu1 %v909_v56 }
  0x35   :  { %660 = vmatpush3.bf16.msra.mxu0 %v927_v62  ;;  %v434_v62 = vld [vmem:[%s1083_s4 + $0x2] ss:$0 sm:$0xff] }
  0x36   :  { %662 = vmatprep.subr.bf16.mxu0 %v933_v0 }
  0x37   :  { %692 = vmatpush3.bf16.msra.mxu1 %v931_v63 }
  0x38   :  { %694 = vmatprep.subr.bf16.mxu1 %v945_v5 }
  0x39   :  { %664 = vmatpush3.bf16.msra.mxu0 %v963_v14 }
  0x3a   :  { %666 = vmatprep.subr.bf16.mxu0 %v975_v20 }
  0x3b   :  { %696 = vmatpush3.bf16.msra.mxu1 %v973_v19 }
  0x3c   :  { %698 = vmatprep.subr.bf16.mxu1 %v633_v27 }
  0x3d   :  { %668 = vmatpush3.bf16.msra.mxu0 %v603_v35 }
  0x3e   :  { %670 = vmatprep.subr.bf16.mxu0 %v605_v37 }
  0x3f   :  { %700 = vmatpush3.bf16.msra.mxu1 %v635_v36 }
  0x40   :  { %702 = vmatprep.subr.bf16.mxu1 %v637_v42 }
  0x41   :  { %672 = vmatpush3.bf16.msra.mxu0 %v607_v46 }
  0x43   :  { %704 = vmatpush3.bf16.msra.mxu1 %v639_v47 }
  0x44   :  { %310 = vmatmul.mubr.f32.vlgmr.msra.gmra.mrb[2].mxu0 %v94_v3 }
  0x46   :  { %380 = vmatmul.mubr.f32.vlgmr.msra.gmra.mrb[2].mxu1 %v96_v7 }
  0xf7   :  { %v469_v12 = vpop.f32.mrb[0].mxu0 }
  0xf8   :  { %v470_v17 = vpop.f32.mrb[1].mxu0 }
  0xf9   :  { %v504_v21 = vpop.f32.mrb[0].mxu1  ;;  %v471_v25 = vadd.f32 %v470_v17, %v469_v12 }
  0xfa   :  { %v505_v26 = vpop.f32.mrb[1].mxu1 }
  0xfb   :  { %v506_v33 = vadd.f32 %v505_v26, %v504_v21  ;;  %v171_v34 = vadd.f32 %v471_v25, %v431_v16 }
  0xfd   :  { %v241_v38 = vadd.f32 %v506_v33, %v171_v34 }
  0xff   :  { %v244_v57 = vmax.f32 %v241_v38, 0.0 }
 0x101   :  { %v393_v63 = vmul.f32 %v432_v59, %v244_v57 }
 0x117   :  { %v539_v39 = vpop.f32.mrb[2].mxu0 }
 0x118   :  { %v540_v43 = vpop.f32.mrb[3].mxu0 }
 0x119   :  { %v574_v48 = vpop.f32.mrb[2].mxu1  ;;  %v541_v51 = vadd.f32 %v540_v43, %v539_v39 }
 0x11a   :  { %v575_v52 = vpop.f32.mrb[3].mxu1 }
 0x11b   :  { %v576_v55 = vadd.f32 %v575_v52, %v574_v48  ;;  %v312_v56 = vadd.f32 %v541_v51, %v431_v16 }
 0x11d   :  { %v382_v58 = vadd.f32 %v576_v55, %v312_v56 }
 0x11f   :  { %v385_v61 = vmax.f32 %v382_v58, 0.0 }
 0x121   :  { %v398_v0 = vmul.f32 %v433_v60, %v385_v61  ;;  %v400_v1 = vmul.f32 %v385_v61, %v244_v57 }
 0x123   :  { %v399_v2 = vadd.f32 %v398_v0, %v393_v63  ;;  %v405_v4 = vmul.f32 %v434_v62, %v400_v1 }
 0x125   :  { %v406_v5 = vadd.f32 %v405_v4, %v399_v2 }
 0x127   :  { %v408_v6 = vsel %vm407_vm0, %v406_v5, 0.0 }
 0x128   :  { %409 = vadd.xlane.f32.xlu0 %v408_v6 }
 0x1b5   :  { %v410_v10 = vpop.xlane.xlu0 %409 }
 0x1b6   :  { %v418_v11 = vadd.f32 %v435_v9, %v410_v10 }
 0x1b8   :  { %v436_v13 = vmul.f32 -1.442695, %v418_v11 }
 0x1ba   :  { %705 = vpow2.f32 %v436_v13 }
 0x1c4   :  { %v706_v14 = vpop.eup %705 }
 0x1c5   :  { %v422_v15 = vadd.f32 1.0, %v706_v14 }
 0x1c7   :  { %707 = vrcp.f32 %v422_v15 }
 0x1d1   :  { %v708_v18 = vpop.eup %707 }
 0x1d2   :  { %426 = vst.msk [vmem:[%s1084_s6] sm:$0xff] %vm425_vm1, %v708_v18 }

</bundles_post_ra>
